<compile_context>
chip_gen: v5e
topology: v5e:2x2
jax: 0.10.0
libtpu: 0.0.40
codegen_flags: <defaults>
</compile_context>

<pallas_src>
import functools

import jax
import jax.numpy as jnp
from jax import lax
from jax.experimental import pallas as pl
from jax.experimental.pallas import tpu as pltpu

_MiB = 1 << 20
_SYM_TM = 128        # row-block size for the symmetric-Gram path
_SYM_MIN_C = 256     # enable symmetric path only when C >= this (MXU-bound)


def _cdiv(a, b):
    return -(-a // b)


def _gram_partial_kernel(x_ref, gram_ref, rowsum_ref, acc_ref, rsum_ref, *,
                         use_covariance, symmetric):
    """Accumulate one K-tile of one sample's (partial) Gram matrix.

    grid = (ksplit, B, nk_per); the K (reduction) axis is last.

    x_ref      : (C, TK)  VMEM  K-tile of one sample (native dtype)
    gram_ref   : (C, C)   VMEM  partial X·Xᵀ output  (written at last K step)
    rowsum_ref : (1, C)   VMEM  partial row sums     (written at last K step)
    acc_ref    : (C, C)   VMEM  f32 Gram accumulator (resident across K)
    rsum_ref   : (1, C)   VMEM  f32 row-sum accumulator
    """
    k = pl.program_id(2)
    nk = pl.num_programs(2)

    @pl.when(k == 0)
    def _():
        acc_ref[...] = jnp.zeros_like(acc_ref)
        if use_covariance:
            rsum_ref[...] = jnp.zeros_like(rsum_ref)

    x = x_ref[...]                                   # (C, TK), native dtype
    C = x.shape[0]

    if symmetric:
        # Only the upper-block-triangle of X·Xᵀ is accumulated; the wrapper
        # mirrors it.  Saves up to ~1.8x MXU work when compute-bound (large C).
        nb = C // _SYM_TM
        for bi in range(nb):
            xi = x[bi * _SYM_TM:(bi + 1) * _SYM_TM, :]
            for bj in range(bi, nb):
                xj = x[bj * _SYM_TM:(bj + 1) * _SYM_TM, :]
                acc_ref[pl.ds(bi * _SYM_TM, _SYM_TM),
                        pl.ds(bj * _SYM_TM, _SYM_TM)] += lax.dot_general(
                    xi, xj,
                    dimension_numbers=(((1,), (1,)), ((), ())),
                    preferred_element_type=jnp.float32)
    else:
        # X·Xᵀ without materializing a transpose: contract the LAST dim of both.
        acc_ref[...] += lax.dot_general(
            x, x,
            dimension_numbers=(((1,), (1,)), ((), ())),
            preferred_element_type=jnp.float32)

    if use_covariance:
        # Row sums via a ones-vector matmul (MXU) rather than an XLU reduce,
        # stored lane-dense as (1, C).
        ones = jnp.ones((1, x.shape[1]), x.dtype)
        rsum_ref[...] += lax.dot_general(
            ones, x,
            dimension_numbers=(((1,), (1,)), ((), ())),
            preferred_element_type=jnp.float32)

    @pl.when(k == nk - 1)
    def _():
        gram_ref[...] = acc_ref[...]
        if use_covariance:
            rowsum_ref[...] = rsum_ref[...]
        else:
            rowsum_ref[...] = jnp.zeros_like(rowsum_ref)


def _choose_tk(hw, c, itemsize, max_tk=8192, in_budget_bytes=24 * _MiB):
    """Largest 128-multiple K tile within a VMEM budget, preferring no padding."""
    cands = [t for t in (8192, 4096, 2048, 1024, 512, 256, 128) if t <= max_tk]

    def fits(tk):
        return 3 * c * tk * itemsize <= in_budget_bytes   # worst-case 3 buffers

    for tk in cands:                                      # exact divisor first
        if hw % tk == 0 and fits(tk):
            return tk
    for tk in cands:                                      # padded, <=12.5% waste
        if not fits(tk):
            continue
        hw_pad = _cdiv(hw, tk) * tk
        if (hw_pad - hw) * 8 <= hw:
            return tk
    return 128                                            # minimal-padding fallback


def style_loss_pallas(x_nchw, target=None, strength=1.0, use_covariance=False,
                      compute_loss=True, tk=None, ksplit=None,
                      cast_bf16=False, use_symmetric=None, input_buffers=None):
    """Pallas-TPU StyleLoss.static_loss.

    Returns (per-sample grams (B, C, C) f32, scalar style loss f32).
    'capture' mode == compute_loss=False (loss is 0; caller builds the target
    from the returned grams).  'loss' mode == compute_loss=True with `target`
    a (C, C) Gram target.
    """
    B, C, H, W = x_nchw.shape
    HW = H * W

    x = x_nchw.reshape(B, C, HW)
    if cast_bf16 and x.dtype == jnp.float32:
        # bf16 feeds the MXU at full rate and halves HBM traffic; accumulation
        # stays f32 via preferred_element_type.
        x = x.astype(jnp.bfloat16)
    itemsize = x.dtype.itemsize

    # ---- K tiling; pad HW with zero columns (they add nothing to X·Xᵀ or s).
    if tk is None:
        tk = _choose_tk(HW, C, itemsize)
    assert tk % 128 == 0, tk
    hw_pad = _cdiv(HW, tk) * tk
    if hw_pad != HW:
        x = jnp.pad(x, ((0, 0), (0, 0), (0, hw_pad - HW)))
    nk = hw_pad // tk

    # ---- v7x megacore: at B == 1 the batch axis can't use both TensorCores,
    #      so split the K range into 2 "parallel" chunks and sum in the wrapper.
    if ksplit is None:
        ksplit = 2 if (B == 1 and nk >= 2 and nk % 2 == 0) else 1
    assert nk % ksplit == 0, (nk, ksplit)
    nk_per = nk // ksplit

    # ---- symmetric-Gram block skipping (pays only when MXU-bound: large C).
    if use_symmetric is None:
        use_symmetric = (C >= _SYM_MIN_C and C % _SYM_TM == 0)
    if use_symmetric:
        assert C % _SYM_TM == 0, C

    # ---- input multi-buffering: small C => short compute per tile => 3 buffers.
    if input_buffers is None:
        input_buffers = 3 if (C < 128 and nk_per >= 3) else 2

    x_idx = lambda s, b, k: (b, 0, s * nk_per + k)
    x_spec = pl.BlockSpec((None, C, tk), x_idx)
    if input_buffers > 2:
        try:
            x_spec = pl.BlockSpec((None, C, tk), x_idx,
                                  pipeline_mode=pl.Buffered(int(input_buffers)))
        except TypeError:
            pass   # BlockSpec without pipeline_mode: stay double-buffered

    # ---- explicit scoped-VMEM limit (v5e default is only 16 MiB).
    est_vmem = (input_buffers * C * tk * itemsize          # x pipeline buffers
                + C * C * 4 + 8 * 128 * 4                  # acc + rowsum scratch
                + 2 * (C * C * 4 + 8 * 128 * 4))           # double-buffered outs
    vmem_limit = int(min(56 * _MiB, max(32 * _MiB, 2 * est_vmem)))

    kernel = functools.partial(
        _gram_partial_kernel,
        use_covariance=use_covariance,
        symmetric=use_symmetric,
    )

    cost = pl.CostEstimate(
        flops=2 * B * C * C * hw_pad,
        transcendentals=0,
        bytes_accessed=(B * C * hw_pad * itemsize
                        + ksplit * B * (C * C + C) * 4),
    )

    gram_part, rowsum_part = pl.pallas_call(
        kernel,
        out_shape=(
            jax.ShapeDtypeStruct((ksplit, B, C, C), jnp.float32),
            jax.ShapeDtypeStruct((ksplit, B, 1, C), jnp.float32),
        ),
        grid_spec=pltpu.PrefetchScalarGridSpec(
            num_scalar_prefetch=0,
            grid=(ksplit, B, nk_per),                       # reduction axis last
            in_specs=[x_spec],
            out_specs=(
                pl.BlockSpec((None, None, C, C), lambda s, b, k: (s, b, 0, 0)),
                pl.BlockSpec((None, None, 1, C), lambda s, b, k: (s, b, 0, 0)),
            ),
            scratch_shapes=[
                pltpu.VMEM((C, C), jnp.float32),            # Gram accumulator
                pltpu.VMEM((1, C), jnp.float32),            # row-sum accumulator
            ],
        ),
        compiler_params=pltpu.CompilerParams(
            dimension_semantics=("parallel", "parallel", "arbitrary"),
            vmem_limit_bytes=vmem_limit,
        ),
        cost_estimate=cost,
    )(x)

    # ---- finalize in the wrapper (cheap: O(B*C^2) work for XLA) -------------
    gram = jnp.sum(gram_part, axis=0)                       # (B, C, C) = X·Xᵀ
    if use_symmetric:
        blk = jnp.arange(C) // _SYM_TM
        strict_upper = (blk[:, None] < blk[None, :]).astype(gram.dtype)
        gram = gram + jnp.swapaxes(gram * strict_upper, -1, -2)
    if use_covariance:
        # (X − m·1ᵀ)(X − m·1ᵀ)ᵀ = X·Xᵀ − s·sᵀ/HW   (rank-1 correction; s = row sums)
        # TODO(synk): cancellation-prone for large activation means (post-ReLU
        # features); center in the wrapper instead if it drifts on real data.
        s = jnp.sum(rowsum_part, axis=0)                    # (B, 1, C)
        gram = gram - jnp.einsum('bxc,bxd->bcd', s, s) / float(HW)
    grams = gram / float(C * HW)                            # / nelement per sample

    if compute_loss:
        diff = grams - target[None].astype(jnp.float32)
        per_sample_mse = jnp.mean(diff * diff, axis=(1, 2))  # nn.MSELoss (mean)
        loss = jnp.sum(per_sample_mse) * (float(strength) / float(B))
    else:
        loss = jnp.zeros((), jnp.float32)
    return grams, loss


def _reference_loss(x_nchw, target, strength, use_covariance=False):
    """Pure-JAX reproduction of StyleLoss.static_loss forward ('loss' mode)."""
    B, C, H, W = x_nchw.shape
    xf = x_nchw.reshape(B, C, H * W).astype(jnp.float32)
    if use_covariance:
        xf = xf - jnp.mean(xf, axis=2, keepdims=True)
    grams = jnp.einsum('bcm,bdm->bcd', xf, xf) / float(C * H * W)
    mse = jnp.mean((grams - target[None].astype(jnp.float32)) ** 2, axis=(1, 2))
    return grams, jnp.sum(mse) * float(strength) / float(B)


if __name__ == "__main__":
    key = jax.random.PRNGKey(0)
    strength = 1.5
    blend_weight = 1.0            # StyleLoss.blend_weight (set during capture)

    # (name, B, C, H, W, use_covariance, tk, cast_bf16, rtol, atol)
    cases = [
        ("base",       2,   4, 16, 16, False, 128,  False, 1e-4, 1e-5),
        ("covariance", 2,   4, 16, 16, True,  128,  False, 1e-4, 1e-5),
        ("ksplit_b1",  1,   8, 16, 16, True,  128,  False, 1e-4, 1e-5),
        ("buffered3",  2,   4, 16, 48, False, 128,  False, 1e-4, 1e-5),
        ("ragged_hw",  2,   4, 14, 14, True,  None, False, 1e-4, 1e-5),
        ("symmetric",  1, 256, 16, 32, True,  128,  False, 1e-4, 1e-5),
        ("bf16",       2,   4, 16, 16, False, 128,  True,  1e-3, 1e-4),
    ]

    for idx, (name, B, C, H, W, use_cov, tk, cast, rtol, atol) in enumerate(cases):
        k_style, k_content = jax.random.split(jax.random.fold_in(key, idx))
        style_input = jax.random.normal(k_style, (B, C, H, W), jnp.float32)
        content_input = jax.random.normal(k_content, (B, C, H, W), jnp.float32)

        # --- 'capture' mode: target = blend_weight * mean_b gram_b ----------
        style_grams, _ = style_loss_pallas(style_input, None, strength, use_cov,
                                           compute_loss=False, tk=tk,
                                           cast_bf16=cast)
        target = blend_weight * jnp.mean(style_grams, axis=0)

        # --- 'loss' mode ------------------------------------------------------
        grams, loss = style_loss_pallas(content_input, target, strength, use_cov,
                                        compute_loss=True, tk=tk,
                                        cast_bf16=cast)
        loss = jax.block_until_ready(loss)

        # --- pure-JAX reference -----------------------------------------------
        if cast:  # compare against the same bf16-rounded inputs
            style_ref_in = style_input.astype(jnp.bfloat16).astype(jnp.float32)
            content_ref_in = content_input.astype(jnp.bfloat16).astype(jnp.float32)
        else:
            style_ref_in, content_ref_in = style_input, content_input
        ref_style_grams, _ = _reference_loss(style_ref_in,
                                             jnp.zeros((C, C), jnp.float32),
                                             strength, use_cov)
        ref_target = blend_weight * jnp.mean(ref_style_grams, axis=0)
        ref_grams, ref_loss = _reference_loss(content_ref_in, ref_target,
                                              strength, use_cov)

        assert jnp.allclose(grams, ref_grams, rtol=rtol, atol=atol), \
            (name, "gram mismatch")
        assert jnp.allclose(loss, ref_loss, rtol=rtol, atol=atol), \
            (name, float(loss), float(ref_loss))

    print("KERNEL_OK")
</pallas_src>

<mosaic_0001>
module attributes {stable_mosaic.version = 11 : i64} {
  func.func @_gram_partial_kernel(%arg0: i32, %arg1: i32, %arg2: i32, %arg3: memref<1x4x128xf32, #tpu.memory_space<vmem>>, %arg4: memref<1x1x4x4xf32, #tpu.memory_space<vmem>>, %arg5: memref<1x1x1x4xf32, #tpu.memory_space<vmem>>, %arg6: memref<4x4xf32, #tpu.memory_space<vmem>>, %arg7: memref<1x4xf32, #tpu.memory_space<vmem>>) attributes {dimension_semantics = [#tpu.dimension_semantics<parallel>, #tpu.dimension_semantics<parallel>, #tpu.dimension_semantics<arbitrary>], iteration_bounds = array<i64: 1, 2, 2>, scalar_prefetch = 0 : i64, scratch_operands = 2 : i64, tpu.core_type = #tpu.core_type<tc>, window_params = [{transform_indices = @transform_0, window_bounds = array<i64: 1, 4, 128>}, {transform_indices = @transform_1, window_bounds = array<i64: 1, 1, 4, 4>}, {transform_indices = @transform_2, window_bounds = array<i64: 1, 1, 1, 4>}]} {
    %c0_i32 = arith.constant 0 : i32
    %0 = arith.cmpi eq, %arg2, %c0_i32 : i32
    %1 = arith.extui %0 : i1 to i32
    %c0_i32_0 = arith.constant 0 : i32
    %2 = arith.cmpi ne, %1, %c0_i32_0 : i32
    scf.if %2 {
      %cst_8 = arith.constant 0.000000e+00 : f32
      %12 = vector.broadcast %cst_8 : f32 to vector<4x4xf32>
      %c0_9 = arith.constant 0 : index
      %c0_10 = arith.constant 0 : index
      %13 = vector.load %arg6[%c0_9, %c0_10] : memref<4x4xf32, #tpu.memory_space<vmem>>, vector<4x4xf32>
      tpu.vector_store %arg6[%c0_9, %c0_10], %12 {strides = array<i32>} : memref<4x4xf32, #tpu.memory_space<vmem>>, vector<4x4xf32>,
    } else {
    }
    %c0 = arith.constant 0 : index
    %c0_1 = arith.constant 0 : index
    %c0_2 = arith.constant 0 : index
    %3 = vector.load %arg3[%c0, %c0_1, %c0_2] : memref<1x4x128xf32, #tpu.memory_space<vmem>>, vector<1x4x128xf32>
    %4 = vector.shape_cast %3 : vector<1x4x128xf32> to vector<4x128xf32>
    %c0_3 = arith.constant 0 : index
    %c0_4 = arith.constant 0 : index
    %5 = vector.load %arg6[%c0_3, %c0_4] : memref<4x4xf32, #tpu.memory_space<vmem>>, vector<4x4xf32>
    %cst = arith.constant dense<0.000000e+00> : vector<4x4xf32>
    %6 = tpu.matmul %4, %4, %cst {dimension_numbers = #tpu.dot_dimension_numbers<[1], [1], [0], [0], [0, 0, 1, 0], [], []>} : vector<4x128xf32>, vector<4x128xf32>, vector<4x4xf32> -> vector<4x4xf32>
    %7 = arith.addf %5, %6 : vector<4x4xf32>
    %c0_5 = arith.constant 0 : index
    %c0_6 = arith.constant 0 : index
    %8 = vector.load %arg6[%c0_5, %c0_6] : memref<4x4xf32, #tpu.memory_space<vmem>>, vector<4x4xf32>
    tpu.vector_store %arg6[%c0_5, %c0_6], %7 {strides = array<i32>} : memref<4x4xf32, #tpu.memory_space<vmem>>, vector<4x4xf32>,
    %c1_i32 = arith.constant 1 : i32
    %9 = arith.cmpi eq, %arg2, %c1_i32 : i32
    %10 = arith.extui %9 : i1 to i32
    %c0_i32_7 = arith.constant 0 : i32
    %11 = arith.cmpi ne, %10, %c0_i32_7 : i32
    scf.if %11 {
      %c0_8 = arith.constant 0 : index
      %c0_9 = arith.constant 0 : index
      %12 = vector.load %arg6[%c0_8, %c0_9] : memref<4x4xf32, #tpu.memory_space<vmem>>, vector<4x4xf32>
      %c0_10 = arith.constant 0 : index
      %c0_11 = arith.constant 0 : index
      %c0_12 = arith.constant 0 : index
      %c0_13 = arith.constant 0 : index
      %13 = vector.load %arg4[%c0_10, %c0_11, %c0_12, %c0_13] : memref<1x1x4x4xf32, #tpu.memory_space<vmem>>, vector<1x1x4x4xf32>
      %14 = vector.shape_cast %13 : vector<1x1x4x4xf32> to vector<4x4xf32>
      %15 = vector.shape_cast %12 : vector<4x4xf32> to vector<1x1x4x4xf32>
      tpu.vector_store %arg4[%c0_10, %c0_11, %c0_12, %c0_13], %15 {strides = array<i32>} : memref<1x1x4x4xf32, #tpu.memory_space<vmem>>, vector<1x1x4x4xf32>,
      %cst_14 = arith.constant 0.000000e+00 : f32
      %16 = vector.broadcast %cst_14 : f32 to vector<1x4xf32>
      %c0_15 = arith.constant 0 : index
      %c0_16 = arith.constant 0 : index
      %c0_17 = arith.constant 0 : index
      %c0_18 = arith.constant 0 : index
      %17 = vector.load %arg5[%c0_15, %c0_16, %c0_17, %c0_18] : memref<1x1x1x4xf32, #tpu.memory_space<vmem>>, vector<1x1x1x4xf32>
      %18 = vector.shape_cast %17 : vector<1x1x1x4xf32> to vector<1x4xf32>
      %19 = vector.shape_cast %16 : vector<1x4xf32> to vector<1x1x1x4xf32>
      tpu.vector_store %arg5[%c0_15, %c0_16, %c0_17, %c0_18], %19 {strides = array<i32>} : memref<1x1x1x4xf32, #tpu.memory_space<vmem>>, vector<1x1x1x4xf32>,
    } else {
    }
    return
  }
  func.func @transform_0(%arg0: i32, %arg1: i32, %arg2: i32) -> (i32, i32, i32) {
    %c2_i32 = arith.constant 2 : i32
    %0 = arith.muli %arg0, %c2_i32 : i32
    %1 = arith.addi %0, %arg2 : i32
    %c0_i32 = arith.constant 0 : i32
    %c0_i32_0 = arith.constant 0 : i32
    return %arg1, %c0_i32, %1 : i32, i32, i32
  }
  func.func @transform_1(%arg0: i32, %arg1: i32, %arg2: i32) -> (i32, i32, i32, i32) {
    %c0_i32 = arith.constant 0 : i32
    %c0_i32_0 = arith.constant 0 : i32
    %c0_i32_1 = arith.constant 0 : i32
    return %arg0, %arg1, %c0_i32, %c0_i32_0 : i32, i32, i32, i32
  }
  func.func @transform_2(%arg0: i32, %arg1: i32, %arg2: i32) -> (i32, i32, i32, i32) {
    %c0_i32 = arith.constant 0 : i32
    %c0_i32_0 = arith.constant 0 : i32
    %c0_i32_1 = arith.constant 0 : i32
    return %arg0, %arg1, %c0_i32, %c0_i32_0 : i32, i32, i32, i32
  }
}

</mosaic_0001>

<bundles_post_ra>
// kernel: tpu_custom_call.1
= control target key start
LH: loop header
LB: loop body
LE: loop exit
PB: predicated region body
PF: predicated region fallthrough
CT: control target
= control target key end

     0   :  { %s922_s0 = inlined_call_operand.hbm [shape: f32[2,4,256], index: 0, kind: input, shape index: {}]   ;;  %s923_s1 = inlined_call_operand.hbm [shape: f32[1,2,4,4], index: 1, kind: output, shape index: {0}]   ;;  %s924_s2 = inlined_call_operand.hbm [shape: f32[1,2,1,4], index: 2, kind: output, shape index: {1}]  }
   0x1   :  { %928 = sst [smem:[#allocation15_spill]] %s922_s0 }
   0x2   :  { %8 = vsyncpa [#allocation5], 0 }
   0x3   :  { %10 = vsyncpa [#allocation5 + $0x1], 0 }
   0x4   :  { %11 = vsyncpa [#allocation6], 0 }
   0x5   :  { %13 = vsyncpa [#allocation6 + $0x1], 0 }
   0x6   :  { %14 = vsyncpa [#allocation9], 0 }
   0x7   :  { %16 = vsyncpa [#allocation9 + $0x1], 0  ;;  %s730_s9 = smov 0   ;;  %s732_s10 = smov 0  }
   0x8   :  { %s734_s11 = smov 0   ;;  %s736_s12 = smov 0  }
   0x9   :  { %s738_s13 = smov 0   ;;  %s740_s14 = smov 0  }
   0xa   :  { %s742_s15 = smov 0   ;;  %s744_s16 = smov 0  }
   0xb   :  { %s746_s17 = smov 0   ;;  %s748_s18 = smov 0  }
   0xc   :  { %s750_s19 = smov 0  }
   0xd LB: > { %s402_s20 = sadd.s32 4294967295, %s711_s19   ;;  %s403_s21 = sadd.s32 4294967294, %s711_s19   ;;  %s711_s19 = sphi %s750_s19, %s22_s19   ;;  %s707_s18 = sphi %s748_s18, %s948_s18   ;;  %s703_s17 = sphi %s746_s17, %s947_s17   ;;  %s699_s16 = sphi %s744_s16, %s946_s16   ;;  %s695_s15 = sphi %s742_s15, %s945_s15   ;;  %s691_s14 = sphi %s740_s14, %s944_s14   ;;  %s687_s13 = sphi %s738_s13, %s943_s13   ;;  %s683_s12 = sphi %s736_s12, %s942_s12   ;;  %s679_s11 = sphi %s734_s11, %s941_s11   ;;  %s675_s10 = sphi %s732_s10, %s940_s10   ;;  %s671_s9 = sphi %s730_s9, %s939_s9  }
   0xe   : > { %s34_s22 = sadd.s32 1, %s703_s17  ;;  %s37_s23 = sadd.s32 1, %s707_s18 }
   0xf   : > { %p35_p0 = scmp.ge.s32.totalorder %s34_s22, 2  ;;  %s54_s24 = sadd.s32 1, %s691_s14 }
  0x10   : > { %p61_p1 = scmp.ne.s32.totalorder %s691_s14, %s687_s13  ;;  %p62_p2 = scmp.eq.s32.totalorder %s711_s19, 0 }
  0x11   : > { %s950_s22 = smov (%p35_p0, %s34_s22), 0  ;;  %s952_s23 = smov (!%p35_p0, %s37_s23), %s707_s18 }
  0x12   : > { %929 = sst [smem:[#allocation13_spill]] %s950_s22  ;;  %s50_s25 = ssub.s32 %s703_s17, %s950_s22 }
  0x13   : > { %p796_p3 = por %p62_p2, %p61_p1  ;;  %p39_p4 = scmp.ge.s32.totalorder %s952_s23, 2 }
  0x14   : > { %p67_p5 = scmp.ne.s32.totalorder %s687_s13, %s683_s12  ;;  %p68_p6 = scmp.eq.s32.totalorder %s402_s20, 0 }
  0x15   : > { %s82_s27 = sadd.s32 1, %s679_s11  ;;  %s954_s23 = smov (%p39_p4, %s952_s23), 0 }
  0x16   : > { %931 = sst [smem:[#allocation14_spill]] %s954_s23  ;;  %p804_p7 = por %p68_p6, %p67_p5 }
  0x17   : > { %p92_p8 = scmp.ne.s32.totalorder %s679_s11, %s675_s10  ;;  %s49_s29 = ssub.s32 %s707_s18, %s954_s23 }
  0x18   : > { %p93_p9 = scmp.eq.s32.totalorder %s402_s20, 3  ;;  %s51_s30 = sor.u32 %s50_s25, %s49_s29 }
  0x19   : > { %p80_p10 = scmp.eq.s32.totalorder %s49_s29, 0  ;;  %p52_p11 = scmp.eq.s32.totalorder %s51_s30, 0 }
  0x1a   : > { %p812_p12 = por %p93_p9, %p92_p8  ;;  %p98_p13 = scmp.ne.s32.totalorder %s675_s10, %s671_s9 }
  0x1b   : > { %s817_s4 = scalar_select %p80_p10, %s679_s11, %s82_s27  }
  0x1c   : > { %s820_s5 = scalar_select %p52_p11, %s691_s14, %s54_s24  }
  0x1d   : > { %p99_p0 = scmp.eq.s32.totalorder %s403_s21, 3  ;;  %p435_p1 = scmp.lt.s32.totalorder %s711_s19, 4 }
  0x1e   : > { %s147_s7 = sand.u32 1, %s691_s14   ;;  %s407_s12 = sshll.u32 %s707_s18, 1 }
  0x1f   : > { %p825_p2 = por %p99_p0, %p98_p13  ;;  %s406_s8 = sshll.u32 %s147_s7, 2 }
  0x20   : > { %s157_s20 = sadd.s32 %s703_s17, %s407_s12  ;;  %s151_s25 = scalar_lea.vmem [#allocation4], %s406_s8 }
  0x21   : > { %s163_s29 = sshll.u32 %s151_s25, 4  ;;  %s408_s30 = sshll.u32 %s157_s20, 2  ;;  %s164_s29 = int_to_ptr.vmem [resolvable:$true] %s163_s29 }
  0x22   : > { %s935_s0 = sld [smem:[#allocation15_spill]]  ;;  %p425_p4 = pnand %p435_p1, %p796_p3 }
  0x23   : > { %p409_p5 = scmp.ge.s32.totalorder %s711_s19, 1  ;;  %s148_s22 = scalar_lea.sflag [#allocation5], %s147_s7 }
  0x24   : > { %p168_p6 = scmp.lt.s32.totalorder %s711_s19, 5 }
  0x26   : > { %p169_p8 = pnand %p409_p5, %p168_p6 }
  0x27   : > { %s174_s8 = sand.u32 (!%p169_p8), 1, %s687_s13  }
  0x28   : > { %s159_s23 = scalar_lea.hbm %s935_s0, %s408_s30  ;;  %172 = sbr.rel (%p169_p8) target bundleno = 225 (0xe1), region = 24 }
  0x29   : > { %s161_s21 = sshll.u32 %s159_s23, 4  ;;  %s410_s12 = sshll.u32 (!%p169_p8), %s174_s8, 2  ;;  %s162_s21 = int_to_ptr.hbm [resolvable:$true] %s161_s21 }
  0x2a   : > { %427 = dma.hbm_to_vmem [thread:$0]  (!%p425_p4), %s162_s21, 64, %s164_s29, %s148_s22  }
  0x2b   : > { %s175_s20 = scalar_lea.sflag (!%p169_p8), [#allocation5], %s174_s8  ;;  %s178_s25 = scalar_lea.vmem (!%p169_p8), [#allocation4], %s410_s12 }
  0x2d   : > { %658 = dma.done.wait (%p804_p7), %s175_s20, 64  }
  0x2e   : > { %660 = vsyncadd (%p804_p7), %s175_s20, 4294967232  ;;  %s845_s23 = sand.u32 1, %s675_s10   ;;  %p412_p3 = scmp.ne.s32.totalorder %s695_s15, 0 }
  0x2f   : > { %s411_s22 = sshll.u32 %s845_s23, 2  ;;  %s927_s7 = scalar_lea.vmem [#allocation8], %s845_s23 }
  0x30   : > { %s197_s26 = scalar_lea.vmem [#allocation7], %s411_s22  ;;  %209 = sbr.rel (%p412_p3) target bundleno = 55 (0x37), region = 32 }
  0x35   : > { %vm210_vm0 = vcmask 27648   ;;  %v713_v0 = vmov 0.0  }
  0x36   : > { %211 = vst.msk [vmem:[#allocation2] sm:$0xf] %vm210_vm0, %v713_v0 }
  0x37 PF: > { %v212_v1 = vld [vmem:[%s178_s25] sm:$0xf]  ;;  %vm235_vm1 = vcmask 27648   ;;  %p413_p7 = scmp.ne.s32.totalorder %s695_s15, 1 }
  0x38   : > { %229 = vmatpush.xpose.msra.mxu0 %v212_v1 }
  0x3b   : > { %230 = vmatmul.f32.vlgmr.msra.gmra.mxu0 %v212_v1 }
  0x3d   : > { %v213_v2 = vld [vmem:[#allocation2] sm:$0xf] }
  0xb7   : > { %240 = sbr.rel (%p413_p7) target bundleno = 196 (0xc4), region = 36 }
  0xb8   : > { %v231_v3 = vpop.f32.mrf.mxu0 }
  0xb9   : > { %v234_v4 = vadd.f32 %v231_v3, %v213_v2 }
  0xbb   : > { %236 = vst.msk [vmem:[#allocation2] sm:$0xf] %vm235_vm1, %v234_v4 }
  0xbc   : > { %vm243_vm2 = vcmask 24576   ;;  %v714_v6 = vmov 0.0  }
  0xbd   : > { %244 = vst.msk [vmem:[%s927_s7] sm:$0x1] %vm243_vm2, %v714_v6 }
  0xc2   : > { %v241_v5 = vld [vmem:[#allocation2] sm:$0xf] }
  0xc3   : > { %242 = vst.msk [vmem:[%s197_s26] sm:$0xf] %vm235_vm1, %v241_v5 }
  0xc4 PF: > { %s415_s28 = sshll.u32 %s699_s16, 2  ;;  %s264_s24 = sshll.u32 %s197_s26, 4  ;;  %s265_s24 = int_to_ptr.vmem [resolvable:$true] %s264_s24 }
  0xc5   : > { %s262_s27 = scalar_lea.hbm %s923_s1, %s415_s28  ;;  %s246_s21 = scalar_lea.sflag [#allocation6], %s845_s23 }
  0xc6   : > { %s266_s15 = sshll.u32 %s262_s27, 4  ;;  %s577_s22 = scalar_lea.hbm %s923_s1, 8  ;;  %s267_s15 = int_to_ptr.hbm [resolvable:$true] %s266_s15 }
  0xc7   : > { %s571_s8 = sshra.s32 %s267_s15, 4  ;;  %s572_s8 = int_to_ptr.hbm [resolvable:$true] %s571_s8 }
  0xc8   : > { %s573_s12 = scalar_lea.hbm %s572_s8, 4  ;;  %p578_p13 = scmp.lt.s32.totalorder %s572_s8, %s923_s1 }
  0xc9   : > { %p574_p9 = scmp.ne.s32.totalorder %s572_s8, %s573_s12  ;;  %p579_p0 = scmp.lt.s32.totalorder %s577_s22, %s573_s12 }
  0xcb   : > { %p575_p10 = pnand %p574_p9, %p812_p12  ;;  %p580_p1 = por %p579_p0, %p578_p13 }
  0xcd   : > { %p576_p11 = pneg %p575_p10 }
  0xcf   : > { %p581_p4 = pnand %p580_p1, %p576_p11 }
  0xd1   : > { %584 = shalt.err (!%p581_p4)
}
  0xd2   : > { %420 = dma.vmem_to_hbm [thread:$0]  (%p812_p12), %s265_s24, 64, %s267_s15, %s246_s21  }
  0xd3   : > { %s277_s29 = scalar_lea.hbm %s924_s2, %s699_s16  ;;  %s936_s30 = scalar_lea.vmem [#allocation8], %s845_s23 }
  0xd4   : > { %s279_s27 = sshll.u32 %s936_s30, 4  ;;  %s281_s0 = sshll.u32 %s277_s29, 4  ;;  %s280_s27 = int_to_ptr.vmem [resolvable:$true] %s279_s27  ;;  %s282_s0 = int_to_ptr.hbm [resolvable:$true] %s281_s0 }
  0xd5   : > { %s251_s7 = scalar_lea.sflag [#allocation9], %s845_s23  ;;  %s599_s8 = sshra.s32 %s282_s0, 4  ;;  %s600_s8 = int_to_ptr.hbm [resolvable:$true] %s599_s8 }
  0xd6   : > { %s601_s12 = scalar_lea.hbm %s600_s8, 1  ;;  %s605_s24 = scalar_lea.hbm %s924_s2, 2 }
  0xd7   : > { %p602_p5 = scmp.ne.s32.totalorder %s600_s8, %s601_s12  ;;  %p606_p3 = scmp.lt.s32.totalorder %s600_s8, %s924_s2 }
  0xd8   : > { %p607_p7 = scmp.lt.s32.totalorder %s605_s24, %s601_s12 }
  0xd9   : > { %p603_p6 = pnand %p602_p5, %p812_p12 }
  0xda   : > { %p608_p9 = por %p607_p7, %p606_p3 }
  0xdb   : > { %p604_p8 = pneg %p603_p6 }
  0xdd   : > { %p609_p10 = pnand %p608_p9, %p604_p8 }
  0xdf   : > { %612 = shalt.err (!%p609_p10)
}
  0xe0   : > { %421 = dma.vmem_to_hbm [thread:$0]  (%p812_p12), %s280_s27, 16, %s282_s0, %s251_s7  }
  0xe1 PF: > { %p436_p11 = scmp.ge.s32.totalorder %s711_s19, 2  ;;  %s293_s16 = sand.u32 1, %s671_s9  }
  0xe2   : > { %s294_s23 = scalar_lea.sflag [#allocation6], %s293_s16 }
  0xe3   : > { %p429_p13 = pnand %p436_p11, %p825_p2 }
  0xe5   : > { %p430_p0 = pneg %p429_p13 }
  0xe7   : > { %662 = dma.done.wait (%p430_p0), %s294_s23, 64  }
  0xe8   : > { %664 = vsyncadd (%p430_p0), %s294_s23, 4294967232  ;;  %s304_s22 = scalar_lea.sflag [#allocation9], %s293_s16 }
  0xe9   : > { %666 = dma.done.wait (%p430_p0), %s304_s22, 16  }
  0xea   : > { %668 = vsyncadd (%p430_p0), %s304_s22, 4294967280  ;;  %s22_s19 = sadd.s32 1, %s711_s19   ;;  %s937_s3 = sld [smem:[#allocation13_spill]] }
  0xeb   : > { %p19_p1 = scmp.ge.s32.totalorder %s22_s19, 6   ;;  %s938_s6 = sld [smem:[#allocation14_spill]] }
  0xec   : > { %s939_s9 = smov %s675_s10  ;;  %s940_s10 = smov %s679_s11 }
  0xed   : > { %s941_s11 = smov %s817_s4  ;;  %s942_s12 = smov %s687_s13 }
  0xee   : > { %s943_s13 = smov %s691_s14  ;;  %s944_s14 = smov %s820_s5 }
  0xef   : > { %s945_s15 = smov %s703_s17  ;;  %s946_s16 = smov %s707_s18 }
  0xf0   : > { %s947_s17 = smov %s937_s3  ;;  %21 = sbr.rel (!%p19_p1) target bundleno = 13 (0xd), region = 94 }
  0xf1   : > { %s948_s18 = smov %s938_s6 }
  0xf5   :  { %309 = vsyncpa [#allocation5], 1 }
  0xf6   :  { %311 = vsyncpa [#allocation5 + $0x1], 1 }
  0xf7   :  { %312 = vsyncpa [#allocation6], 1 }
  0xf8   :  { %314 = vsyncpa [#allocation6 + $0x1], 1 }
  0xf9   :  { %315 = vsyncpa [#allocation9], 1 }
  0xfa   :  { %317 = vsyncpa [#allocation9 + $0x1], 1 }

</bundles_post_ra>
